<compile_context>
chip_gen: v6e
topology: v6e:2x2x1
jax: 0.10.0
libtpu: 0.0.40
codegen_flags: <defaults>
</compile_context>

<pallas_src>
import functools
import math

import jax
import jax.numpy as jnp
from jax.experimental import pallas as pl
from jax.experimental.pallas import tpu as pltpu

HIDDEN = 128          # fc1/fc2 width (from the PyTorch module)
SUB = 8               # f32 sublane multiple
TB_MAX = 4096         # batch-tile cap (safe for v5e/v6e/v7x scoped VMEM)
CHUNK_MAX = 512       # in-kernel strip-mine chunk (rows)


def _round_up(x: int, m: int) -> int:
    return ((x + m - 1) // m) * m


def _cdiv(a: int, b: int) -> int:
    return (a + b - 1) // b


def _qnet_kernel(x_ref, w1_ref, b1_ref, w2_ref, b2_ref, w3_ref, b3_ref, out_ref,
                 *, chunk: int):
    # Weights/biases are VMEM-resident (constant index_map) - load once per step.
    w1 = w1_ref[...]
    b1 = b1_ref[...]
    w2 = w2_ref[...]
    b2 = b2_ref[...]
    w3 = w3_ref[...]
    b3 = b3_ref[...]

    tb = out_ref.shape[0]
    n_chunks = tb // chunk  # chunk always divides the batch tile (static)

    # Strip-mine the batch tile: chain fc1->fc2->fc3 per chunk so the h1/h2
    # intermediates stay small (<= chunk x 128 f32) instead of (TB, 128).
    for c in range(n_chunks):
        r0 = c * chunk
        xc = x_ref[r0:r0 + chunk, :]
        h1 = jnp.maximum(
            jnp.dot(xc, w1, preferred_element_type=jnp.float32) + b1, 0.0)
        h2 = jnp.maximum(
            jnp.dot(h1, w2, preferred_element_type=jnp.float32) + b2, 0.0)
        out_ref[r0:r0 + chunk, :] = (
            jnp.dot(h2, w3, preferred_element_type=jnp.float32) + b3)


@jax.jit
def qnetwork_forward(x, w1, b1, w2, b2, w3, b3):
    """Fused forward pass of QNetwork.

    x : (B, state_size) f32
    w1: (state_size, 128)  b1: (1, 128)
    w2: (128, 128)         b2: (1, 128)
    w3: (128, action_size) b3: (1, action_size)
    returns: (B, action_size) f32 Q-values
    """
    B, S = x.shape
    A = w3.shape[1]

    # Only round the batch up to the f32 sublane multiple (<= 7 extra rows).
    B_pad = _round_up(B, SUB)
    if B_pad != B:
        x = jnp.pad(x, ((0, B_pad - B), (0, 0)))

    # Batch tile: ~half the batch (so the grid splits across both TensorCores on
    # v7x), rounded to the sublane / chunk multiple and capped for VMEM.
    TB = max(SUB, _round_up(_cdiv(B_pad, 2), SUB))
    TB = min(TB, TB_MAX)
    if TB > CHUNK_MAX:
        TB = _round_up(TB, CHUNK_MAX)   # stays <= TB_MAX and <= B_pad
        chunk = CHUNK_MAX
    else:
        chunk = TB

    grid = (_cdiv(B_pad, TB),)          # Pallas clips the partial last block

    flops = 2 * B_pad * (S * HIDDEN + HIDDEN * HIDDEN + HIDDEN * A)
    bytes_accessed = (
        B_pad * S * 4                                   # x read
        + (S * HIDDEN + HIDDEN * HIDDEN + HIDDEN * A) * 4  # weights
        + (HIDDEN + HIDDEN + A) * 4                     # biases
        + B_pad * A * 4                                 # narrow output write
    )

    out = pl.pallas_call(
        functools.partial(_qnet_kernel, chunk=chunk),
        out_shape=jax.ShapeDtypeStruct((B_pad, A), jnp.float32),
        grid=grid,
        in_specs=[
            pl.BlockSpec((TB, S), lambda i: (i, 0)),            # x: batch-tiled
            pl.BlockSpec((S, HIDDEN), lambda i: (0, 0)),        # w1: resident
            pl.BlockSpec((1, HIDDEN), lambda i: (0, 0)),        # b1: resident
            pl.BlockSpec((HIDDEN, HIDDEN), lambda i: (0, 0)),   # w2: resident
            pl.BlockSpec((1, HIDDEN), lambda i: (0, 0)),        # b2: resident
            pl.BlockSpec((HIDDEN, A), lambda i: (0, 0)),        # w3: resident
            pl.BlockSpec((1, A), lambda i: (0, 0)),             # b3: resident
        ],
        out_specs=pl.BlockSpec((TB, A), lambda i: (i, 0)),      # narrow f32 output
        compiler_params=pltpu.CompilerParams(
            dimension_semantics=("parallel",),   # shard batch tiles across TCs (v7x)
            vmem_limit_bytes=32 * 1024 * 1024,
        ),
        cost_estimate=pl.CostEstimate(
            flops=flops, transcendentals=0, bytes_accessed=bytes_accessed),
    )(x, w1, b1, w2, b2, w3, b3)

    if B_pad != B:
        out = out[:B]
    return out


def init_qnetwork_params(key, state_size, action_size):
    """Deterministic init mimicking PyTorch nn.Linear default:
    U(-1/sqrt(fan_in), 1/sqrt(fan_in)) for both weight and bias.
    Weights are stored as (in_features, out_features) (i.e. W.T of PyTorch)."""
    def linear(key, fan_in, fan_out):
        kw, kb = jax.random.split(key)
        bound = 1.0 / math.sqrt(fan_in)
        w = jax.random.uniform(kw, (fan_in, fan_out), jnp.float32, -bound, bound)
        b = jax.random.uniform(kb, (1, fan_out), jnp.float32, -bound, bound)
        return w, b

    k1, k2, k3 = jax.random.split(key, 3)
    w1, b1 = linear(k1, state_size, HIDDEN)
    w2, b2 = linear(k2, HIDDEN, HIDDEN)
    w3, b3 = linear(k3, HIDDEN, action_size)
    return w1, b1, w2, b2, w3, b3


def qnetwork_reference(x, w1, b1, w2, b2, w3, b3):
    """Pure-JAX f32 reference for correctness checking."""
    h1 = jnp.maximum(x @ w1 + b1, 0.0)
    h2 = jnp.maximum(h1 @ w2 + b2, 0.0)
    return h2 @ w3 + b3


if __name__ == "__main__":
    # Small shapes consistent with the module: flat observation vector + discrete
    # action space (e.g. ExamEnv with an 8-dim state, 4 actions).
    state_size = 8
    action_size = 4

    key = jax.random.PRNGKey(0)
    kx, kx2, kx3, kp = jax.random.split(key, 4)
    params = init_qnetwork_params(kp, state_size, action_size)

    # Case 1: batch already a multiple of 8, single grid step.
    x = jax.random.normal(kx, (8, state_size), dtype=jnp.float32)
    out = jax.block_until_ready(qnetwork_forward(x, *params))
    ref = qnetwork_reference(x, *params)
    assert out.shape == (8, action_size), out.shape
    assert jnp.allclose(out, ref, atol=1e-4, rtol=1e-4), "mismatch vs reference (B=8)"

    # Case 2: ragged batch (exercises sublane pad + slice path).
    x2 = jax.random.normal(kx2, (5, state_size), dtype=jnp.float32)
    out2 = jax.block_until_ready(qnetwork_forward(x2, *params))
    ref2 = qnetwork_reference(x2, *params)
    assert out2.shape == (5, action_size), out2.shape
    assert jnp.allclose(out2, ref2, atol=1e-4, rtol=1e-4), "mismatch vs reference (B=5)"

    # Case 3: multi-step grid with a partial last block (B=20 -> pad 24, TB=16).
    x3 = jax.random.normal(kx3, (20, state_size), dtype=jnp.float32)
    out3 = jax.block_until_ready(qnetwork_forward(x3, *params))
    ref3 = qnetwork_reference(x3, *params)
    assert out3.shape == (20, action_size), out3.shape
    assert jnp.allclose(out3, ref3, atol=1e-4, rtol=1e-4), "mismatch vs reference (B=20)"

    print("KERNEL_OK")
</pallas_src>

<mosaic_0001>
module attributes {stable_mosaic.version = 11 : i64} {
  func.func @_qnet_kernel(%arg0: i32, %arg1: memref<8x8xf32, #tpu.memory_space<vmem>>, %arg2: memref<8x128xf32, #tpu.memory_space<vmem>>, %arg3: memref<1x128xf32, #tpu.memory_space<vmem>>, %arg4: memref<128x128xf32, #tpu.memory_space<vmem>>, %arg5: memref<1x128xf32, #tpu.memory_space<vmem>>, %arg6: memref<128x4xf32, #tpu.memory_space<vmem>>, %arg7: memref<1x4xf32, #tpu.memory_space<vmem>>, %arg8: memref<8x4xf32, #tpu.memory_space<vmem>>) attributes {dimension_semantics = [#tpu.dimension_semantics<parallel>], iteration_bounds = array<i64: 1>, scalar_prefetch = 0 : i64, scratch_operands = 0 : i64, tpu.core_type = #tpu.core_type<tc>, window_params = [{transform_indices = @transform_0, window_bounds = array<i64: 8, 8>}, {pipeline_mode = #tpu.pipeline_mode<synchronous>, transform_indices = @transform_1, window_bounds = array<i64: 8, 128>}, {pipeline_mode = #tpu.pipeline_mode<synchronous>, transform_indices = @transform_2, window_bounds = array<i64: 1, 128>}, {pipeline_mode = #tpu.pipeline_mode<synchronous>, transform_indices = @transform_3, window_bounds = array<i64: 128, 128>}, {pipeline_mode = #tpu.pipeline_mode<synchronous>, transform_indices = @transform_4, window_bounds = array<i64: 1, 128>}, {pipeline_mode = #tpu.pipeline_mode<synchronous>, transform_indices = @transform_5, window_bounds = array<i64: 128, 4>}, {pipeline_mode = #tpu.pipeline_mode<synchronous>, transform_indices = @transform_6, window_bounds = array<i64: 1, 4>}, {transform_indices = @transform_7, window_bounds = array<i64: 8, 4>}]} {
    %c0 = arith.constant 0 : index
    %c0_0 = arith.constant 0 : index
    %0 = vector.load %arg2[%c0, %c0_0] : memref<8x128xf32, #tpu.memory_space<vmem>>, vector<8x128xf32>
    %c0_1 = arith.constant 0 : index
    %c0_2 = arith.constant 0 : index
    %1 = vector.load %arg3[%c0_1, %c0_2] : memref<1x128xf32, #tpu.memory_space<vmem>>, vector<1x128xf32>
    %c0_3 = arith.constant 0 : index
    %c0_4 = arith.constant 0 : index
    %2 = vector.load %arg4[%c0_3, %c0_4] : memref<128x128xf32, #tpu.memory_space<vmem>>, vector<128x128xf32>
    %c0_5 = arith.constant 0 : index
    %c0_6 = arith.constant 0 : index
    %3 = vector.load %arg5[%c0_5, %c0_6] : memref<1x128xf32, #tpu.memory_space<vmem>>, vector<1x128xf32>
    %c0_7 = arith.constant 0 : index
    %c0_8 = arith.constant 0 : index
    %4 = vector.load %arg6[%c0_7, %c0_8] : memref<128x4xf32, #tpu.memory_space<vmem>>, vector<128x4xf32>
    %c0_9 = arith.constant 0 : index
    %c0_10 = arith.constant 0 : index
    %5 = vector.load %arg7[%c0_9, %c0_10] : memref<1x4xf32, #tpu.memory_space<vmem>>, vector<1x4xf32>
    %c0_11 = arith.constant 0 : index
    %c0_12 = arith.constant 0 : index
    %6 = vector.load %arg1[%c0_11, %c0_12] : memref<8x8xf32, #tpu.memory_space<vmem>>, vector<8x8xf32>
    %cst = arith.constant dense<0.000000e+00> : vector<8x128xf32>
    %7 = tpu.matmul %6, %0, %cst {dimension_numbers = #tpu.dot_dimension_numbers<[1], [0], [0], [1], [0, 0, 1, 1], [], []>} : vector<8x8xf32>, vector<8x128xf32>, vector<8x128xf32> -> vector<8x128xf32>
    %8 = vector.broadcast %1 : vector<1x128xf32> to vector<8x128xf32>
    %9 = arith.addf %7, %8 : vector<8x128xf32>
    %cst_13 = arith.constant 0.000000e+00 : f32
    %10 = vector.broadcast %cst_13 : f32 to vector<8x128xf32>
    %11 = arith.maximumf %9, %10 : vector<8x128xf32>
    %cst_14 = arith.constant dense<0.000000e+00> : vector<8x128xf32>
    %12 = tpu.matmul %11, %2, %cst_14 {dimension_numbers = #tpu.dot_dimension_numbers<[1], [0], [0], [1], [0, 0, 1, 1], [], []>} : vector<8x128xf32>, vector<128x128xf32>, vector<8x128xf32> -> vector<8x128xf32>
    %13 = vector.broadcast %3 : vector<1x128xf32> to vector<8x128xf32>
    %14 = arith.addf %12, %13 : vector<8x128xf32>
    %cst_15 = arith.constant 0.000000e+00 : f32
    %15 = vector.broadcast %cst_15 : f32 to vector<8x128xf32>
    %16 = arith.maximumf %14, %15 : vector<8x128xf32>
    %cst_16 = arith.constant dense<0.000000e+00> : vector<8x4xf32>
    %17 = tpu.matmul %16, %4, %cst_16 {dimension_numbers = #tpu.dot_dimension_numbers<[1], [0], [0], [1], [0, 0, 1, 1], [], []>} : vector<8x128xf32>, vector<128x4xf32>, vector<8x4xf32> -> vector<8x4xf32>
    %18 = vector.broadcast %5 : vector<1x4xf32> to vector<8x4xf32>
    %19 = arith.addf %17, %18 : vector<8x4xf32>
    %c0_17 = arith.constant 0 : index
    %c0_18 = arith.constant 0 : index
    %20 = vector.load %arg8[%c0_17, %c0_18] : memref<8x4xf32, #tpu.memory_space<vmem>>, vector<8x4xf32>
    tpu.vector_store %arg8[%c0_17, %c0_18], %19 {strides = array<i32>} : memref<8x4xf32, #tpu.memory_space<vmem>>, vector<8x4xf32>,
    return
  }
  func.func @transform_0(%arg0: i32) -> (i32, i32) {
    %c0_i32 = arith.constant 0 : i32
    %c0_i32_0 = arith.constant 0 : i32
    return %arg0, %c0_i32 : i32, i32
  }
  func.func @transform_1(%arg0: i32) -> (i32, i32) {
    %c0_i32 = arith.constant 0 : i32
    %c0_i32_0 = arith.constant 0 : i32
    %c0_i32_1 = arith.constant 0 : i32
    return %c0_i32, %c0_i32_0 : i32, i32
  }
  func.func @transform_2(%arg0: i32) -> (i32, i32) {
    %c0_i32 = arith.constant 0 : i32
    %c0_i32_0 = arith.constant 0 : i32
    %c0_i32_1 = arith.constant 0 : i32
    return %c0_i32, %c0_i32_0 : i32, i32
  }
  func.func @transform_3(%arg0: i32) -> (i32, i32) {
    %c0_i32 = arith.constant 0 : i32
    %c0_i32_0 = arith.constant 0 : i32
    %c0_i32_1 = arith.constant 0 : i32
    return %c0_i32, %c0_i32_0 : i32, i32
  }
  func.func @transform_4(%arg0: i32) -> (i32, i32) {
    %c0_i32 = arith.constant 0 : i32
    %c0_i32_0 = arith.constant 0 : i32
    %c0_i32_1 = arith.constant 0 : i32
    return %c0_i32, %c0_i32_0 : i32, i32
  }
  func.func @transform_5(%arg0: i32) -> (i32, i32) {
    %c0_i32 = arith.constant 0 : i32
    %c0_i32_0 = arith.constant 0 : i32
    %c0_i32_1 = arith.constant 0 : i32
    return %c0_i32, %c0_i32_0 : i32, i32
  }
  func.func @transform_6(%arg0: i32) -> (i32, i32) {
    %c0_i32 = arith.constant 0 : i32
    %c0_i32_0 = arith.constant 0 : i32
    %c0_i32_1 = arith.constant 0 : i32
    return %c0_i32, %c0_i32_0 : i32, i32
  }
  func.func @transform_7(%arg0: i32) -> (i32, i32) {
    %c0_i32 = arith.constant 0 : i32
    %c0_i32_0 = arith.constant 0 : i32
    return %arg0, %c0_i32 : i32, i32
  }
}

</mosaic_0001>

<bundles_post_ra>
// kernel: qnetwork_forward.1
= control target key start
LH: loop header
LB: loop body
LE: loop exit
PB: predicated region body
PF: predicated region fallthrough
CT: control target
= control target key end

     0   :  { %12 = vsyncpa [#allocation3], 0  ;;  %s689_s0 = inlined_call_operand.vmem [shape: f32[8,8], index: 0, kind: input, shape index: {}]   ;;  %s690_s1 = inlined_call_operand.hbm [shape: f32[8,128], index: 1, kind: input, shape index: {}]   ;;  %s691_s2 = inlined_call_operand.vmem [shape: f32[1,128], index: 2, kind: input, shape index: {}]   ;;  %s692_s3 = inlined_call_operand.vmem [shape: f32[128,128], index: 3, kind: input, shape index: {}]   ;;  %s693_s4 = inlined_call_operand.hbm [shape: f32[1,128], index: 4, kind: input, shape index: {}]   ;;  %s694_s5 = inlined_call_operand.vmem [shape: f32[128,4], index: 5, kind: input, shape index: {}]   ;;  %s695_s6 = inlined_call_operand.vmem [shape: f32[1,4], index: 6, kind: input, shape index: {}]   ;;  %s696_s7 = inlined_call_operand.vmem [shape: f32[8,4], index: 7, kind: output, shape index: {}]  }
   0x1   :  { %13 = vsyncpa [#allocation5], 0  ;;  %s492_s24 = smov [#allocation2]   ;;  %s493_s26 = smov [#allocation4]  }
   0x2   :  { %s22_s25 = sshll.u32 %s492_s24, 4  ;;  %s36_s27 = sshll.u32 %s493_s26, 4  ;;  %s23_s25 = int_to_ptr.vmem [resolvable:$true] %s22_s25  ;;  %s37_s27 = int_to_ptr.vmem [resolvable:$true] %s36_s27 }
   0x3   :  { %s456_s28 = scalar_lea.vmem %s23_s25, 128  ;;  %p461_p1 = scmp.lt.s32.totalorder %s23_s25, %s23_s25 }
   0x4   :  { %p457_p0 = scmp.ne.s32.totalorder %s23_s25, %s456_s28  ;;  %p462_p2 = scmp.lt.s32.totalorder %s456_s28, %s456_s28 }
   0x6   :  { %p463_p3 = por %p462_p2, %p461_p1 }
   0x8   :  { %p464_p4 = pnand %p463_p3, %p457_p0 }
   0xa   :  { %467 = shalt.err (!%p464_p4)
}
   0xb   :  { %25 = dma.hbm_to_vmem [thread:$0]  %s690_s1, 128, %s23_s25, [#allocation3]  }
   0xc   :  { %s476_s8 = scalar_lea.vmem %s37_s27, 16  ;;  %s480_s9 = scalar_lea.vmem %s37_s27, 32 }
   0xd   :  { %p477_p5 = scmp.ne.s32.totalorder %s37_s27, %s476_s8  ;;  %p481_p6 = scmp.lt.s32.totalorder %s37_s27, %s37_s27 }
   0xe   :  { %p482_p7 = scmp.lt.s32.totalorder %s480_s9, %s476_s8 }
  0x10   :  { %p483_p8 = por %p482_p7, %p481_p6 }
  0x12   :  { %p484_p9 = pnand %p483_p8, %p477_p5 }
  0x14   :  { %487 = shalt.err (!%p484_p9)
}
  0x15   :  { %39 = dma.hbm_to_vmem [thread:$0]  %s693_s4, 16, %s37_s27, [#allocation5]  }
  0x16   :  { %488 = dma.done.wait [#allocation3], 128  }
  0x17   :  { %489 = vsyncadd [#allocation3], 4294967168 }
  0x18   :  { %490 = dma.done.wait [#allocation5], 16  }
  0x19   :  { %491 = vsyncadd [#allocation5], 4294967280  ;;  %v494_v0 = vmov 0.0   ;;  %vm495_vm0 = vmmov 0   ;;  %vm93_vm1 = vcmask 64512   ;;  %v50_v1 = vld [vmem:[#allocation2] sm:$0xff] }
  0x1a   :  { %369 = vmatprep.subr.mxu0 %v494_v0  ;;  %371 = vmatprep.mubr.msk.f32.mxu0 %vm495_vm0, %v494_v0  ;;  %v86_v2 = vld [vmem:[%s689_s0] sm:$0xff]  ;;  %v67_v3 = vld [vmem:[%s692_s3 + $0x78] sm:$0xff]  ;;  %v66_v4 = vld [vmem:[%s692_s3 + $0x70] sm:$0xff]  ;;  %vm321_vm2 = vcmask 31744  }
  0x1b   :  { %374 = vmatprep.subr.mxu1 %v494_v0  ;;  %406 = vmatprep.mubr.msk.f32.mxu1 %vm495_vm0, %v494_v0  ;;  %v65_v5 = vld [vmem:[%s692_s3 + $0x68] sm:$0xff]  ;;  %v64_v6 = vld [vmem:[%s692_s3 + $0x60] sm:$0xff]  ;;  %v63_v7 = vld [vmem:[%s692_s3 + $0x58] sm:$0xff] }
  0x1c   :  { %370 = vmatpush3.msra.mxu0 %v50_v1  ;;  %375 = vmatpush3.msra.mxu1 %v67_v3  ;;  %v62_v8 = vld [vmem:[%s692_s3 + $0x50] sm:$0xff]  ;;  %v61_v9 = vld [vmem:[%s692_s3 + $0x48] sm:$0xff]  ;;  %v60_v10 = vld [vmem:[%s692_s3 + $0x40] sm:$0xff] }
  0x1d   :  { %372 = vmatmul.mubr.msk.f32.vlgmr.msra.gmra.mxu0 %vm93_vm1, %v86_v2  ;;  %376 = vmatprep.subr.mxu1 %v494_v0  ;;  %v59_v11 = vld [vmem:[%s692_s3 + $0x38] sm:$0xff]  ;;  %v58_v12 = vld [vmem:[%s692_s3 + $0x30] sm:$0xff]  ;;  %v57_v13 = vld [vmem:[%s692_s3 + $0x28] sm:$0xff] }
  0x1e   :  { %377 = vmatpush3.msra.mxu1 %v66_v4  ;;  %409 = vmatprep.subr.mxu0 %v494_v0  ;;  %v56_v14 = vld [vmem:[%s692_s3 + $0x20] sm:$0xff]  ;;  %v55_v15 = vld [vmem:[%s692_s3 + $0x18] sm:$0xff]  ;;  %v54_v16 = vld [vmem:[%s692_s3 + $0x10] sm:$0xff] }
  0x1f   :  { %378 = vmatprep.subr.mxu1 %v494_v0  ;;  %441 = vmatprep.mubr.msk.f32.mxu0 %vm495_vm0, %v494_v0  ;;  %v53_v17 = vld [vmem:[%s692_s3 + $0x8] sm:$0xff]  ;;  %v52_v18 = vld [vmem:[%s692_s3] sm:$0xff]  ;;  %v84_v19 = vld [vmem:[%s694_s5 + $0x78] sm:$0xff] }
  0x20   :  { %379 = vmatpush3.msra.mxu1 %v65_v5  ;;  %v83_v20 = vld [vmem:[%s694_s5 + $0x70] sm:$0xff]  ;;  %410 = vmatpush3.msra.mxu0 %v84_v19  ;;  %v82_v21 = vld [vmem:[%s694_s5 + $0x68] sm:$0xff]  ;;  %v81_v22 = vld [vmem:[%s694_s5 + $0x60] sm:$0xff] }
  0x21   :  { %380 = vmatprep.subr.mxu1 %v494_v0  ;;  %411 = vmatprep.subr.mxu0 %v494_v0  ;;  %v80_v23 = vld [vmem:[%s694_s5 + $0x58] sm:$0xff]  ;;  %v79_v24 = vld [vmem:[%s694_s5 + $0x50] sm:$0xff]  ;;  %v78_v25 = vld [vmem:[%s694_s5 + $0x48] sm:$0xff] }
  0x22   :  { %381 = vmatpush3.msra.mxu1 %v64_v6  ;;  %412 = vmatpush3.msra.mxu0 %v83_v20  ;;  %v77_v26 = vld [vmem:[%s694_s5 + $0x40] sm:$0xff]  ;;  %v76_v27 = vld [vmem:[%s694_s5 + $0x38] sm:$0xff]  ;;  %v75_v28 = vld [vmem:[%s694_s5 + $0x30] sm:$0xff] }
  0x23   :  { %382 = vmatprep.subr.mxu1 %v494_v0  ;;  %413 = vmatprep.subr.mxu0 %v494_v0  ;;  %v74_v29 = vld [vmem:[%s694_s5 + $0x28] sm:$0xff]  ;;  %v73_v30 = vld [vmem:[%s694_s5 + $0x20] sm:$0xff]  ;;  %v72_v31 = vld [vmem:[%s694_s5 + $0x18] sm:$0xff] }
  0x24   :  { %383 = vmatpush3.msra.mxu1 %v63_v7  ;;  %414 = vmatpush3.msra.mxu0 %v82_v21  ;;  %v329_v32 = vld [vmem:[%s691_s2] ss:$0 sm:$0xff]  ;;  %v71_v37 = vld [vmem:[%s694_s5 + $0x10] sm:$0xff]  ;;  %v70_v38 = vld [vmem:[%s694_s5 + $0x8] sm:$0xff] }
  0x25   :  { %384 = vmatprep.subr.mxu1 %v494_v0  ;;  %415 = vmatprep.subr.mxu0 %v494_v0  ;;  %v69_v39 = vld [vmem:[%s694_s5] sm:$0xff]  ;;  %v331_v40 = vld [vmem:[#allocation4] ss:$0 sm:$0xff] }
  0x26   :  { %385 = vmatpush3.msra.mxu1 %v62_v8  ;;  %416 = vmatpush3.msra.mxu0 %v81_v22  ;;  %v332_v45 = vld [vmem:[%s695_s6] ss:$0 sm:$0xff] }
  0x27   :  { %386 = vmatprep.subr.mxu1 %v494_v0  ;;  %417 = vmatprep.subr.mxu0 %v494_v0 }
  0x28   :  { %387 = vmatpush3.msra.mxu1 %v61_v9  ;;  %418 = vmatpush3.msra.mxu0 %v80_v23 }
  0x29   :  { %388 = vmatprep.subr.mxu1 %v494_v0  ;;  %419 = vmatprep.subr.mxu0 %v494_v0 }
  0x2a   :  { %389 = vmatpush3.msra.mxu1 %v60_v10  ;;  %420 = vmatpush3.msra.mxu0 %v79_v24 }
  0x2b   :  { %390 = vmatprep.subr.mxu1 %v494_v0  ;;  %421 = vmatprep.subr.mxu0 %v494_v0 }
  0x2c   :  { %391 = vmatpush3.msra.mxu1 %v59_v11  ;;  %422 = vmatpush3.msra.mxu0 %v78_v25 }
  0x2d   :  { %392 = vmatprep.subr.mxu1 %v494_v0  ;;  %423 = vmatprep.subr.mxu0 %v494_v0 }
  0x2e   :  { %393 = vmatpush3.msra.mxu1 %v58_v12  ;;  %424 = vmatpush3.msra.mxu0 %v77_v26 }
  0x2f   :  { %394 = vmatprep.subr.mxu1 %v494_v0  ;;  %425 = vmatprep.subr.mxu0 %v494_v0 }
  0x30   :  { %395 = vmatpush3.msra.mxu1 %v57_v13  ;;  %426 = vmatpush3.msra.mxu0 %v76_v27 }
  0x31   :  { %396 = vmatprep.subr.mxu1 %v494_v0  ;;  %427 = vmatprep.subr.mxu0 %v494_v0 }
  0x32   :  { %397 = vmatpush3.msra.mxu1 %v56_v14  ;;  %428 = vmatpush3.msra.mxu0 %v75_v28 }
  0x33   :  { %398 = vmatprep.subr.mxu1 %v494_v0  ;;  %429 = vmatprep.subr.mxu0 %v494_v0 }
  0x34   :  { %399 = vmatpush3.msra.mxu1 %v55_v15  ;;  %430 = vmatpush3.msra.mxu0 %v74_v29 }
  0x35   :  { %400 = vmatprep.subr.mxu1 %v494_v0  ;;  %431 = vmatprep.subr.mxu0 %v494_v0 }
  0x36   :  { %401 = vmatpush3.msra.mxu1 %v54_v16  ;;  %432 = vmatpush3.msra.mxu0 %v73_v30 }
  0x37   :  { %402 = vmatprep.subr.mxu1 %v494_v0  ;;  %433 = vmatprep.subr.mxu0 %v494_v0 }
  0x38   :  { %403 = vmatpush3.msra.mxu1 %v53_v17  ;;  %434 = vmatpush3.msra.mxu0 %v72_v31 }
  0x39   :  { %404 = vmatprep.subr.mxu1 %v494_v0  ;;  %435 = vmatprep.subr.mxu0 %v494_v0 }
  0x3a   :  { %405 = vmatpush3.msra.mxu1 %v52_v18  ;;  %436 = vmatpush3.msra.mxu0 %v71_v37 }
  0x3b   :  { %437 = vmatprep.subr.mxu0 %v494_v0 }
  0x3c   :  { %438 = vmatpush3.msra.mxu0 %v70_v38 }
  0x3d   :  { %439 = vmatprep.subr.mxu0 %v494_v0 }
  0x3e   :  { %440 = vmatpush3.msra.mxu0 %v69_v39 }
  0xdd   :  { %v163_v33 = vpop.f32.mrf.mxu0 }
  0xde   :  { %v164_v34 = vadd.f32 %v329_v32, %v163_v33 }
  0xdf   :  { %v373_v35 = vpop.f32.mrf.mxu0 }
  0xe0   :  { %v167_v36 = vmax.f32 %v164_v34, 0.0 }
  0xe2   :  { %407 = vmatmul.mubr.f32.vlgmr.msra.gmra.mxu1 %v167_v36 }
 0x1a2   :  { %v240_v41 = vpop.f32.mrf.mxu1 }
 0x1a3   :  { %v241_v42 = vadd.f32 %v331_v40, %v240_v41 }
 0x1a4   :  { %v408_v43 = vpop.f32.mrf.mxu1 }
 0x1a5   :  { %v244_v44 = vmax.f32 %v241_v42, 0.0 }
 0x1a7   :  { %442 = vmatmul.mubr.f32.vlgmr.msra.gmra.mxu0 %v244_v44 }
 0x267   :  { %v317_v46 = vpop.f32.mrf.mxu0 }
 0x268   :  { %v318_v47 = vadd.f32 %v332_v45, %v317_v46 }
 0x269   :  { %v443_v48 = vpop.f32.mrf.mxu0 }
 0x26a   :  { %322 = vst.msk [vmem:[%s696_s7] sm:$0xff] %vm321_vm2, %v318_v47 }
 0x26b   :  { %327 = vsyncpa [#allocation3], 1 }
 0x26c   :  { %328 = vsyncpa [#allocation5], 1 }

</bundles_post_ra>
